<compile_context>
chip_gen: v7x
topology: tpu7x:2x2x1
jax: 0.10.0
libtpu: 0.0.40
codegen_flags: <defaults>
</compile_context>

<pallas_src>
import functools

import jax
import jax.numpy as jnp
from jax import lax
from jax.experimental import pallas as pl
from jax.experimental.pallas import tpu as pltpu


# --------------------------------------------------------------------------
# Pallas kernel
# --------------------------------------------------------------------------
def _iter_gauss_kernel(x_ref, k_ref, o_ref, *, iters, relative, eps,
                       approx_recip):
    """x_ref: (TN, HW_p) flattened images; k_ref: (HW_p, HW_p) conv matrix
    (resident across grid steps); o_ref: (TN, HW_p)."""
    mask = x_ref[...]                         # native dtype, no whole-tile cast
    kmat = k_ref[...]                         # matmul dtype (bf16 by default)

    x = mask
    x_prev = mask
    for _ in range(iters):                    # iters is small & static: unroll
        x_prev = x
        # Full depthwise 2-D Gaussian conv == one lane-dense MXU matmul.
        # Cast the LHS to the matmul dtype every iteration (after iter 1 the
        # running value is f32 from the accumulator); accumulate in f32.
        y = jnp.dot(x.astype(kmat.dtype), kmat,
                    preferred_element_type=jnp.float32)
        x = y * mask                          # f32 epilogue on the VPU

    if relative:
        denom = x_prev.astype(jnp.float32) + eps
        if approx_recip:
            x = x * pl.reciprocal(denom, approx=True)   # EUP slot (otherwise idle)
        else:
            x = x / denom                               # exact (strict f32 mode)

    o_ref[...] = x.astype(o_ref.dtype)


# --------------------------------------------------------------------------
# Helpers: Gaussian window, conv matrix, tile sizing
# --------------------------------------------------------------------------
def _gaussian_1d(win_size, sigma):
    i = jnp.arange(win_size, dtype=jnp.float32)
    c = float(win_size // 2)
    return jnp.exp(-((i - c) ** 2) / (2.0 * sigma ** 2))      # NOT normalized


def _band_matrix(n, g, pad):
    """A[h, h'] = g[h' - h + pad] if |h' - h| <= pad else 0  (zero padding)."""
    win = g.shape[0]
    idx = jnp.arange(n)
    d = idx[None, :] - idx[:, None] + pad
    valid = (d >= 0) & (d < win)
    return jnp.where(valid, g[jnp.clip(d, 0, win - 1)], 0.0)


def _round_up(x, m):
    return ((x + m - 1) // m) * m


_MXU_ROWS = 256                       # MXU height on v6e/v7x; 2x128 passes on v5e
_MAX_TILE_ROWS = 2048                 # review-recommended upper bound
_TILE_VMEM_BUDGET = 28 * 1024 * 1024  # fits default scoped VMEM on v6e/v7x


def _choose_tile_rows(n_rows, hw_p, x_bytes, k_bytes, block_n):
    """Pick the image-row tile (tn).  As large as the VMEM budget allows
    (multiple of 256), capped so the grid keeps >= ~4 steps for megacore /
    pipelining, and never padded past what tiny problems need."""
    if block_n is not None:
        tn = min(block_n, _round_up(n_rows, 8))
        return max(8, _round_up(tn, 8))
    # per-row VMEM: double-buffered input + output tiles + ~4 f32 temporaries
    row_bytes = hw_p * (2 * x_bytes + 2 * x_bytes + 4 * 4)
    k_total = 2 * hw_p * hw_p * k_bytes       # K is double-buffered by the pipeline
    avail = max(_TILE_VMEM_BUDGET - k_total, _MXU_ROWS * row_bytes)
    tn = (avail // row_bytes) // _MXU_ROWS * _MXU_ROWS
    tn = int(min(max(tn, _MXU_ROWS), _MAX_TILE_ROWS))
    # keep >= ~4 grid steps when the problem is big enough (v7x: 2 TensorCores)
    tn = min(tn, max(_MXU_ROWS, _round_up((n_rows + 3) // 4, _MXU_ROWS)))
    # tiny problems: don't pad the batch*channel dim past what's needed
    tn = min(tn, _round_up(n_rows, 8))
    return max(8, _round_up(tn, 8))


# --------------------------------------------------------------------------
# Wrapper: builds the Gaussian conv matrix and launches the kernel
# --------------------------------------------------------------------------
def iterative_gaussian(x, *, win_size=7, sigma=1.5, iters=3, relative=True,
                       eps=1e-8, matmul_dtype=jnp.bfloat16, block_n=None):
    """Pallas implementation of IterativeGaussian.forward. x: (B, C, H, W)."""
    assert iters >= 1, "iters must be >= 1 (matches the PyTorch module)"
    assert win_size % 2 == 1, "odd window required for 'same' padding"
    B, C, H, W = x.shape
    HW = H * W
    HW_p = _round_up(HW, 128)          # lane-dense last dim (unmasked stores)
    p = win_size // 2

    matmul_dtype = jnp.dtype(matmul_dtype)
    k_bytes = matmul_dtype.itemsize
    x_bytes = jnp.dtype(x.dtype).itemsize

    # Dense-K cutoff re-derived for v7x (64 MiB physical / 32 MiB default
    # scoped VMEM), accounting for dtype and K double-buffering.
    assert 2 * HW_p * HW_p * k_bytes <= 8 * 1024 * 1024, (
        "dense kron conv matrix too large for VMEM; "
        "TODO(synk): separable two-matmul formulation for large images")

    # Separable Gaussian -> full 2-D conv (zero padding) as one (HW, HW)
    # matrix K = kron(A_H, A_W) (row-major H*W flattening).  Built once in JAX.
    g = _gaussian_1d(win_size, sigma)
    a_h = _band_matrix(H, g, p)
    a_w = _band_matrix(W, g, p)
    kmat = jnp.kron(a_h, a_w)                                  # (HW, HW) f32
    if HW_p != HW:
        kmat = jnp.pad(kmat, ((0, HW_p - HW), (0, HW_p - HW)))
    kmat = kmat.astype(matmul_dtype)

    # Flatten (batch, channel) into independent image rows; pad to the block.
    N = B * C
    x_flat = x.reshape(N, HW)
    if HW_p != HW:
        x_flat = jnp.pad(x_flat, ((0, 0), (0, HW_p - HW)))

    tn = _choose_tile_rows(N, HW_p, x_bytes, k_bytes, block_n)
    Np = _round_up(N, tn)
    if Np != N:
        x_flat = jnp.pad(x_flat, ((0, Np - N), (0, 0)))

    # Explicit scoped-VMEM limit: estimated working set with 2x headroom,
    # clamped to [24 MiB, 40 MiB] (safe on v5e/v6e 128 MiB, v7x 64 MiB physical;
    # above the 16 MiB v5e default so large tiles don't fail to compile).
    est_bytes = (2 * HW_p * HW_p * k_bytes
                 + tn * HW_p * (2 * x_bytes + 2 * x_bytes + 4 * 4))
    vmem_limit = int(min(max(2 * est_bytes, 24 << 20), 40 << 20))

    kernel = functools.partial(
        _iter_gauss_kernel, iters=iters, relative=relative, eps=eps,
        approx_recip=(matmul_dtype != jnp.dtype(jnp.float32)))

    out_flat = pl.pallas_call(
        kernel,
        out_shape=jax.ShapeDtypeStruct((Np, HW_p), x.dtype),
        grid=(Np // tn,),
        in_specs=[
            pl.BlockSpec((tn, HW_p), lambda i: (i, 0)),       # image-row block
            pl.BlockSpec((HW_p, HW_p), lambda i: (0, 0)),     # conv matrix (resident)
        ],
        out_specs=pl.BlockSpec((tn, HW_p), lambda i: (i, 0)),
        compiler_params=pltpu.CompilerParams(
            dimension_semantics=("parallel",),
            vmem_limit_bytes=vmem_limit),
    )(x_flat, kmat)

    return out_flat[:N, :HW].reshape(B, C, H, W)


# --------------------------------------------------------------------------
# Pure-JAX reference (direct depthwise conv, mirrors the PyTorch forward)
# --------------------------------------------------------------------------
def _reference(x, win_size, sigma, iters, relative, eps):
    B, C, H, W = x.shape
    p = win_size // 2
    g = _gaussian_1d(win_size, sigma)
    w2d = jnp.outer(g, g)
    window = jnp.broadcast_to(w2d[None, None], (C, 1, win_size, win_size))
    window = window.astype(x.dtype)

    mask = x
    xr = x
    x1 = xr
    for _ in range(iters):
        x1 = xr
        conv = lax.conv_general_dilated(
            xr, window, window_strides=(1, 1), padding=((p, p), (p, p)),
            dimension_numbers=("NCHW", "OIHW", "NCHW"),
            feature_group_count=C)
        xr = conv * mask
    if relative:
        xr = xr / (x1 + eps)
    return xr


if __name__ == "__main__":
    B, C, H, W = 2, 4, 16, 16
    win_size, sigma, iters, relative = 7, 1.5, 3, True

    key = jax.random.PRNGKey(0)
    # image-like positive input (keeps the relative division well-conditioned)
    x = 0.5 + jax.random.uniform(key, (B, C, H, W), dtype=jnp.float32)

    ref = jax.block_until_ready(
        _reference(x, win_size, sigma, iters, relative, 1e-8))

    # 1) strict-accuracy path (f32 MXU, exact divide): validates semantics tight
    out_f32 = jax.block_until_ready(
        iterative_gaussian(x, win_size=win_size, sigma=sigma, iters=iters,
                           relative=relative, matmul_dtype=jnp.float32))
    assert out_f32.shape == (B, C, H, W), out_f32.shape
    err_f32 = float(jnp.max(jnp.abs(out_f32 - ref)))
    assert jnp.allclose(out_f32, ref, rtol=1e-3, atol=1e-3), err_f32

    # 2) default fast path (bf16 MXU inputs, f32 accumulate, approx reciprocal)
    out_bf16 = jax.block_until_ready(
        iterative_gaussian(x, win_size=win_size, sigma=sigma, iters=iters,
                           relative=relative))
    assert out_bf16.shape == (B, C, H, W), out_bf16.shape
    err_bf16 = float(jnp.max(jnp.abs(out_bf16 - ref)))
    assert bool(jnp.all(jnp.isfinite(out_bf16))), "non-finite output"
    assert jnp.allclose(out_bf16, ref, rtol=4e-2, atol=4e-2), err_bf16

    print("KERNEL_OK")
</pallas_src>

<mosaic_0001>
module attributes {stable_mosaic.version = 11 : i64} {
  func.func @_iter_gauss_kernel(%arg0: i32, %arg1: memref<8x256xf32, #tpu.memory_space<vmem>>, %arg2: memref<256x256xf32, #tpu.memory_space<vmem>>, %arg3: memref<8x256xf32, #tpu.memory_space<vmem>>) attributes {dimension_semantics = [#tpu.dimension_semantics<parallel>], iteration_bounds = array<i64: 1>, scalar_prefetch = 0 : i64, scratch_operands = 0 : i64, tpu.core_type = #tpu.core_type<tc>, window_params = [{transform_indices = @transform_0, window_bounds = array<i64: 8, 256>}, {pipeline_mode = #tpu.pipeline_mode<synchronous>, transform_indices = @transform_1, window_bounds = array<i64: 256, 256>}, {transform_indices = @transform_2, window_bounds = array<i64: 8, 256>}]} {
    %c0 = arith.constant 0 : index
    %c0_0 = arith.constant 0 : index
    %0 = vector.load %arg1[%c0, %c0_0] : memref<8x256xf32, #tpu.memory_space<vmem>>, vector<8x256xf32>
    %c0_1 = arith.constant 0 : index
    %c0_2 = arith.constant 0 : index
    %1 = vector.load %arg2[%c0_1, %c0_2] : memref<256x256xf32, #tpu.memory_space<vmem>>, vector<256x256xf32>
    %cst = arith.constant dense<0.000000e+00> : vector<8x256xf32>
    %2 = tpu.matmul %0, %1, %cst {dimension_numbers = #tpu.dot_dimension_numbers<[1], [0], [0], [1], [0, 0, 1, 1], [], []>} : vector<8x256xf32>, vector<256x256xf32>, vector<8x256xf32> -> vector<8x256xf32>
    %3 = arith.mulf %2, %0 : vector<8x256xf32>
    %cst_3 = arith.constant dense<0.000000e+00> : vector<8x256xf32>
    %4 = tpu.matmul %3, %1, %cst_3 {dimension_numbers = #tpu.dot_dimension_numbers<[1], [0], [0], [1], [0, 0, 1, 1], [], []>} : vector<8x256xf32>, vector<256x256xf32>, vector<8x256xf32> -> vector<8x256xf32>
    %5 = arith.mulf %4, %0 : vector<8x256xf32>
    %cst_4 = arith.constant dense<0.000000e+00> : vector<8x256xf32>
    %6 = tpu.matmul %5, %1, %cst_4 {dimension_numbers = #tpu.dot_dimension_numbers<[1], [0], [0], [1], [0, 0, 1, 1], [], []>} : vector<8x256xf32>, vector<256x256xf32>, vector<8x256xf32> -> vector<8x256xf32>
    %7 = arith.mulf %6, %0 : vector<8x256xf32>
    %cst_5 = arith.constant 9.99999993E-9 : f32
    %8 = vector.broadcast %cst_5 : f32 to vector<8x256xf32>
    %9 = arith.addf %5, %8 : vector<8x256xf32>
    %10 = arith.divf %7, %9 : vector<8x256xf32>
    %c0_6 = arith.constant 0 : index
    %c0_7 = arith.constant 0 : index
    %11 = vector.load %arg3[%c0_6, %c0_7] : memref<8x256xf32, #tpu.memory_space<vmem>>, vector<8x256xf32>
    tpu.vector_store %arg3[%c0_6, %c0_7], %10 {strides = array<i32>} : memref<8x256xf32, #tpu.memory_space<vmem>>, vector<8x256xf32>,
    return
  }
  func.func @transform_0(%arg0: i32) -> (i32, i32) {
    %c0_i32 = arith.constant 0 : i32
    %c0_i32_0 = arith.constant 0 : i32
    return %arg0, %c0_i32 : i32, i32
  }
  func.func @transform_1(%arg0: i32) -> (i32, i32) {
    %c0_i32 = arith.constant 0 : i32
    %c0_i32_0 = arith.constant 0 : i32
    %c0_i32_1 = arith.constant 0 : i32
    return %c0_i32, %c0_i32_0 : i32, i32
  }
  func.func @transform_2(%arg0: i32) -> (i32, i32) {
    %c0_i32 = arith.constant 0 : i32
    %c0_i32_0 = arith.constant 0 : i32
    return %arg0, %c0_i32 : i32, i32
  }
}

</mosaic_0001>

<bundles_post_ra>
// kernel: tpu_custom_call.1
= control target key start
LH: loop header
LB: loop body
LE: loop exit
PB: predicated region body
PF: predicated region fallthrough
CT: control target
= control target key end

     0   :  { %7 = vsyncpa [#allocation3], 0  ;;  %s814_s0 = inlined_call_operand.hbm [shape: f32[8,256], index: 0, kind: input, shape index: {}]   ;;  %s815_s1 = inlined_call_operand.hbm [shape: f32[256,256], index: 1, kind: input, shape index: {}]   ;;  %s816_s2 = inlined_call_operand.hbm [shape: f32[8,256], index: 2, kind: output, shape index: {}]  }
   0x1   :  { %8 = vsyncpa [#allocation6], 0 }
   0x2   :  { %9 = vsyncpa [#allocation4], 0  ;;  %s620_s9 = smov [#allocation2]   ;;  %s621_s11 = smov [#allocation5]  }
   0x3   :  { %s16_s10 = sshll.u32 %s620_s9, 4  ;;  %s25_s12 = sshll.u32 %s621_s11, 4  ;;  %s17_s10 = int_to_ptr.vmem [resolvable:$true] %s16_s10  ;;  %s640_s12 = int_to_ptr.vmem [resolvable:$true] %s25_s12 }
   0x4   :  { %s548_s15 = scalar_lea.hbm %s814_s0, 256 }
   0x5   :  { %p549_p0 = scmp.ne.s32.totalorder %s814_s0, %s548_s15  ;;  %p552_p1 = scmp.lt.u32.totalorder %s548_s15, %s814_s0 }
   0x7   :  { %p554_p2 = pnand %p552_p1, %p549_p0 }
   0x9   :  { %557 = shalt.err (!%p554_p2)
}
   0xa   :  { %s558_s20 = scalar_lea.vmem %s17_s10, 256  ;;  %p563_p4 = scmp.lt.s32.totalorder %s17_s10, %s17_s10 }
   0xb   :  { %p559_p3 = scmp.ne.s32.totalorder %s17_s10, %s558_s20  ;;  %p564_p5 = scmp.lt.s32.totalorder %s558_s20, %s558_s20 }
   0xd   :  { %p565_p6 = por %p564_p5, %p563_p4 }
   0xf   :  { %p566_p7 = pnand %p565_p6, %p559_p3 }
  0x11   :  { %569 = shalt.err (!%p566_p7)
}
  0x12   :  { %19 = dma.hbm_to_vmem [thread:$0]  %s814_s0, 256, %s17_s10, [#allocation3]  }
  0x13   :  { %s570_s25 = scalar_lea.hbm %s815_s1, 8192 }
  0x14   :  { %p571_p8 = scmp.ne.s32.totalorder %s815_s1, %s570_s25  ;;  %p574_p9 = scmp.lt.u32.totalorder %s570_s25, %s815_s1 }
  0x16   :  { %p576_p10 = pnand %p574_p9, %p571_p8 }
  0x18   :  { %579 = shalt.err (!%p576_p10)
}
  0x19   :  { %s580_s30 = scalar_lea.vmem %s640_s12, 8192  ;;  %p585_p12 = scmp.lt.s32.totalorder %s640_s12, %s640_s12 }
  0x1a   :  { %p581_p11 = scmp.ne.s32.totalorder %s640_s12, %s580_s30  ;;  %p586_p13 = scmp.lt.s32.totalorder %s580_s30, %s580_s30 }
  0x1c   :  { %p587_p0 = por %p586_p13, %p585_p12 }
  0x1e   :  { %p588_p1 = pnand %p587_p0, %p581_p11 }
  0x20   :  { %591 = shalt.err (!%p588_p1)
}
  0x21   :  { %s622_s0 = smov 256   ;;  %s623_s3 = smov 16  }
  0x22   :  { %31 = dma.hbm_to_vmem [thread:$0]  %s815_s1, 8192, %s640_s12, [#allocation6], %s622_s0, %s622_s0, %s623_s3  }
  0x23   :  { %614 = dma.done.wait [#allocation3], 256  }
  0x24   :  { %615 = vsyncadd [#allocation3], 4294967040 }
  0x25   :  { %616 = dma.done.wait [#allocation6], 8192  }
  0x26   :  { %617 = vsyncadd [#allocation6], 4294959104  ;;  %v41_v0 = vld [vmem:[#allocation5 + $0x8] sm:$0xff]  ;;  %v43_v1 = vld [vmem:[#allocation5 + $0x18] sm:$0xff]  ;;  %s624_s1 = smov [#allocation7]  }
  0x27   :  { %v40_v2 = vld [vmem:[#allocation5] sm:$0xff]  ;;  %v671_v3 = vpack.c.bf16 %v43_v1, %v41_v0  ;;  %v42_v4 = vld [vmem:[#allocation5 + $0x10] sm:$0xff]  ;;  %v45_v5 = vld [vmem:[#allocation5 + $0x28] sm:$0xff]  ;;  %s337_s6 = sshll.u32 %s624_s1, 4  ;;  %s338_s6 = int_to_ptr.vmem [resolvable:$true] %s337_s6 }
  0x28   :  { %v47_v6 = vld [vmem:[#allocation5 + $0x38] sm:$0xff]  ;;  %v673_v7 = vpack.c.bf16 %v42_v4, %v40_v2  ;;  %v44_v9 = vld [vmem:[#allocation5 + $0x20] sm:$0xff]  ;;  %v46_v10 = vld [vmem:[#allocation5 + $0x30] sm:$0xff]  ;;  %s592_s7 = scalar_lea.vmem %s338_s6, 256  ;;  %p597_p3 = scmp.lt.s32.totalorder %s338_s6, %s338_s6 }
  0x29   :  { %v675_v8 = vpack.c.bf16 %v47_v6, %v45_v5  ;;  %v49_v11 = vld [vmem:[#allocation5 + $0x48] sm:$0xff]  ;;  %348 = vmatprep.subr.bf16.mxu0 %v671_v3  ;;  %v51_v12 = vld [vmem:[#allocation5 + $0x58] sm:$0xff]  ;;  %412 = vmatprep.subr.bf16.mxu1 %v671_v3  ;;  %v680_v13 = vpack.c.bf16 %v46_v10, %v44_v9  ;;  %v48_v15 = vld [vmem:[#allocation5 + $0x40] sm:$0xff]  ;;  %p593_p2 = scmp.ne.s32.totalorder %s338_s6, %s592_s7  ;;  %p598_p4 = scmp.lt.s32.totalorder %s592_s7, %s592_s7 }
  0x2a   :  { %350 = vmatpush1.bf16.msra.mxu0 %v673_v7  ;;  %414 = vmatpush1.bf16.msra.mxu1 %v673_v7  ;;  %v684_v14 = vpack.c.bf16 %v51_v12, %v49_v11  ;;  %v50_v16 = vld [vmem:[#allocation5 + $0x50] sm:$0xff]  ;;  %v53_v17 = vld [vmem:[#allocation5 + $0x68] sm:$0xff]  ;;  %v55_v18 = vld [vmem:[#allocation5 + $0x78] sm:$0xff] }
  0x2b   :  { %352 = vmatprep.subr.bf16.mxu0 %v675_v8  ;;  %416 = vmatprep.subr.bf16.mxu1 %v675_v8  ;;  %v688_v19 = vpack.c.bf16 %v50_v16, %v48_v15  ;;  %v692_v20 = vpack.c.bf16 %v55_v18, %v53_v17  ;;  %v52_v21 = vld [vmem:[#allocation5 + $0x60] sm:$0xff]  ;;  %v54_v22 = vld [vmem:[#allocation5 + $0x70] sm:$0xff]  ;;  %v57_v23 = vld [vmem:[#allocation5 + $0x88] sm:$0xff]  ;;  %p599_p5 = por %p598_p4, %p597_p3 }
  0x2c   :  { %v59_v24 = vld [vmem:[#allocation5 + $0x98] sm:$0xff]  ;;  %v696_v25 = vpack.c.bf16 %v54_v22, %v52_v21  ;;  %v56_v27 = vld [vmem:[#allocation5 + $0x80] sm:$0xff]  ;;  %v58_v28 = vld [vmem:[#allocation5 + $0x90] sm:$0xff] }
  0x2d   :  { %v700_v26 = vpack.c.bf16 %v59_v24, %v57_v23  ;;  %v61_v29 = vld [vmem:[#allocation5 + $0xa8] sm:$0xff]  ;;  %v63_v30 = vld [vmem:[#allocation5 + $0xb8] sm:$0xff]  ;;  %v704_v31 = vpack.c.bf16 %v58_v28, %v56_v27  ;;  %v60_v33 = vld [vmem:[#allocation5 + $0xa0] sm:$0xff]  ;;  %p600_p6 = pnand %p599_p5, %p593_p2 }
  0x2e   :  { %354 = vmatpush1.bf16.msra.mxu0 %v680_v13  ;;  %418 = vmatpush1.bf16.msra.mxu1 %v680_v13  ;;  %v708_v32 = vpack.c.bf16 %v63_v30, %v61_v29  ;;  %v62_v34 = vld [vmem:[#allocation5 + $0xb0] sm:$0xff]  ;;  %v65_v35 = vld [vmem:[#allocation5 + $0xc8] sm:$0xff]  ;;  %v67_v36 = vld [vmem:[#allocation5 + $0xd8] sm:$0xff] }
  0x2f   :  { %356 = vmatprep.subr.bf16.mxu0 %v684_v14  ;;  %420 = vmatprep.subr.bf16.mxu1 %v684_v14  ;;  %v712_v37 = vpack.c.bf16 %v62_v34, %v60_v33  ;;  %v716_v38 = vpack.c.bf16 %v67_v36, %v65_v35  ;;  %v64_v39 = vld [vmem:[#allocation5 + $0xc0] sm:$0xff]  ;;  %v66_v40 = vld [vmem:[#allocation5 + $0xd0] sm:$0xff]  ;;  %v718_v41 = vld [vmem:[#allocation2 + $0x8] sm:$0xff] }
  0x30   :  { %v69_v42 = vld [vmem:[#allocation5 + $0xe8] sm:$0xff]  ;;  %v71_v43 = vld [vmem:[#allocation5 + $0xf8] sm:$0xff]  ;;  %168 = vmatprep.mubr.f32.mxu0 %v718_v41  ;;  %v723_v44 = vpack.c.bf16 %v66_v40, %v64_v39  ;;  %v68_v46 = vld [vmem:[#allocation5 + $0xe0] sm:$0xff] }
  0x31   :  { %v727_v45 = vpack.c.bf16 %v71_v43, %v69_v42  ;;  %v70_v47 = vld [vmem:[#allocation5 + $0xf0] sm:$0xff]  ;;  %v73_v48 = vld [vmem:[#allocation5 + $0x108] sm:$0xff]  ;;  %v75_v49 = vld [vmem:[#allocation5 + $0x118] sm:$0xff] }
  0x32   :  { %358 = vmatpush1.bf16.msra.mxu0 %v688_v19  ;;  %422 = vmatpush1.bf16.msra.mxu1 %v688_v19  ;;  %v731_v50 = vpack.c.bf16 %v70_v47, %v68_v46  ;;  %v735_v51 = vpack.c.bf16 %v75_v49, %v73_v48  ;;  %v72_v52 = vld [vmem:[#allocation5 + $0x100] sm:$0xff]  ;;  %v74_v53 = vld [vmem:[#allocation5 + $0x110] sm:$0xff]  ;;  %v77_v54 = vld [vmem:[#allocation5 + $0x128] sm:$0xff] }
  0x33   :  { %360 = vmatprep.subr.bf16.mxu0 %v692_v20  ;;  %424 = vmatprep.subr.bf16.mxu1 %v692_v20  ;;  %v79_v55 = vld [vmem:[#allocation5 + $0x138] sm:$0xff]  ;;  %v739_v56 = vpack.c.bf16 %v74_v53, %v72_v52  ;;  %v76_v58 = vld [vmem:[#allocation5 + $0x120] sm:$0xff]  ;;  %v78_v59 = vld [vmem:[#allocation5 + $0x130] sm:$0xff] }
  0x34   :  { %v743_v57 = vpack.c.bf16 %v79_v55, %v77_v54  ;;  %v81_v60 = vld [vmem:[#allocation5 + $0x148] sm:$0xff]  ;;  %v83_v61 = vld [vmem:[#allocation5 + $0x158] sm:$0xff]  ;;  %v747_v62 = vpack.c.bf16 %v78_v59, %v76_v58  ;;  %v80_v0 = vld [vmem:[#allocation5 + $0x140] sm:$0xff] }
  0x35   :  { %v751_v63 = vpack.c.bf16 %v83_v61, %v81_v60  ;;  %v82_v1 = vld [vmem:[#allocation5 + $0x150] sm:$0xff]  ;;  %v85_v2 = vld [vmem:[#allocation5 + $0x168] sm:$0xff]  ;;  %v87_v4 = vld [vmem:[#allocation5 + $0x178] sm:$0xff] }
  0x36   :  { %362 = vmatpush1.bf16.msra.mxu0 %v696_v25  ;;  %426 = vmatpush1.bf16.msra.mxu1 %v696_v25  ;;  %v755_v5 = vpack.c.bf16 %v82_v1, %v80_v0  ;;  %v759_v6 = vpack.c.bf16 %v87_v4, %v85_v2  ;;  %v84_v9 = vld [vmem:[#allocation5 + $0x160] sm:$0xff]  ;;  %v86_v10 = vld [vmem:[#allocation5 + $0x170] sm:$0xff]  ;;  %v89_v11 = vld [vmem:[#allocation5 + $0x188] sm:$0xff] }
  0x37   :  { %364 = vmatprep.subr.bf16.mxu0 %v700_v26  ;;  %428 = vmatprep.subr.bf16.mxu1 %v700_v26  ;;  %v91_v12 = vld [vmem:[#allocation5 + $0x198] sm:$0xff]  ;;  %v763_v15 = vpack.c.bf16 %v86_v10, %v84_v9  ;;  %v88_v17 = vld [vmem:[#allocation5 + $0x180] sm:$0xff]  ;;  %v90_v18 = vld [vmem:[#allocation5 + $0x190] sm:$0xff] }
  0x38   :  { %v767_v16 = vpack.c.bf16 %v91_v12, %v89_v11  ;;  %v93_v21 = vld [vmem:[#allocation5 + $0x1a8] sm:$0xff]  ;;  %v95_v22 = vld [vmem:[#allocation5 + $0x1b8] sm:$0xff]  ;;  %v397_v23 = vpack.c.bf16 %v90_v18, %v88_v17  ;;  %v92_v27 = vld [vmem:[#allocation5 + $0x1a0] sm:$0xff] }
  0x39   :  { %v399_v24 = vpack.c.bf16 %v95_v22, %v93_v21  ;;  %v94_v28 = vld [vmem:[#allocation5 + $0x1b0] sm:$0xff]  ;;  %v97_v29 = vld [vmem:[#allocation5 + $0x1c8] sm:$0xff]  ;;  %v99_v30 = vld [vmem:[#allocation5 + $0x1d8] sm:$0xff] }
  0x3a   :  { %366 = vmatpush1.bf16.msra.mxu0 %v704_v31  ;;  %430 = vmatpush1.bf16.msra.mxu1 %v704_v31  ;;  %v401_v33 = vpack.c.bf16 %v94_v28, %v92_v27  ;;  %v403_v34 = vpack.c.bf16 %v99_v30, %v97_v29  ;;  %v96_v35 = vld [vmem:[#allocation5 + $0x1c0] sm:$0xff]  ;;  %v98_v36 = vld [vmem:[#allocation5 + $0x1d0] sm:$0xff]  ;;  %v101_v39 = vld [vmem:[#allocation5 + $0x1e8] sm:$0xff] }
  0x3b   :  { %368 = vmatprep.subr.bf16.mxu0 %v708_v32  ;;  %432 = vmatprep.subr.bf16.mxu1 %v708_v32  ;;  %v103_v40 = vld [vmem:[#allocation5 + $0x1f8] sm:$0xff]  ;;  %v405_v42 = vpack.c.bf16 %v98_v36, %v96_v35  ;;  %v100_v46 = vld [vmem:[#allocation5 + $0x1e0] sm:$0xff]  ;;  %v102_v47 = vld [vmem:[#allocation5 + $0x1f0] sm:$0xff] }
  0x3c   :  { %v407_v43 = vpack.c.bf16 %v103_v40, %v101_v39  ;;  %v409_v48 = vpack.c.bf16 %v102_v47, %v100_v46  ;;  %v38_v49 = vld [vmem:[#allocation2] sm:$0xff] }
  0x3e   :  { %370 = vmatpush1.bf16.msra.mxu0 %v712_v37  ;;  %434 = vmatpush1.bf16.msra.mxu1 %v712_v37 }
  0x3f   :  { %372 = vmatprep.subr.bf16.mxu0 %v716_v38  ;;  %436 = vmatprep.subr.bf16.mxu1 %v716_v38 }
  0x42   :  { %374 = vmatpush1.bf16.msra.mxu0 %v723_v44  ;;  %438 = vmatpush1.bf16.msra.mxu1 %v723_v44 }
  0x43   :  { %376 = vmatprep.subr.bf16.mxu0 %v727_v45  ;;  %440 = vmatprep.subr.bf16.mxu1 %v727_v45 }
  0x46   :  { %378 = vmatpush1.bf16.msra.mxu0 %v731_v50  ;;  %442 = vmatpush1.bf16.msra.mxu1 %v731_v50 }
  0x47   :  { %380 = vmatprep.subr.bf16.mxu0 %v735_v51  ;;  %444 = vmatprep.subr.bf16.mxu1 %v735_v51 }
  0x4a   :  { %382 = vmatpush1.bf16.msra.mxu0 %v739_v56  ;;  %446 = vmatpush1.bf16.msra.mxu1 %v739_v56 }
  0x4b   :  { %384 = vmatprep.subr.bf16.mxu0 %v743_v57  ;;  %448 = vmatprep.subr.bf16.mxu1 %v743_v57 }
  0x4e   :  { %386 = vmatpush1.bf16.msra.mxu0 %v747_v62  ;;  %450 = vmatpush1.bf16.msra.mxu1 %v747_v62 }
  0x4f   :  { %388 = vmatprep.subr.bf16.mxu0 %v751_v63  ;;  %452 = vmatprep.subr.bf16.mxu1 %v751_v63 }
  0x52   :  { %390 = vmatpush1.bf16.msra.mxu0 %v755_v5  ;;  %454 = vmatpush1.bf16.msra.mxu1 %v755_v5 }
  0x53   :  { %392 = vmatprep.subr.bf16.mxu0 %v759_v6  ;;  %456 = vmatprep.subr.bf16.mxu1 %v759_v6 }
  0x56   :  { %394 = vmatpush1.bf16.msra.mxu0 %v763_v15  ;;  %458 = vmatpush1.bf16.msra.mxu1 %v763_v15 }
  0x57   :  { %396 = vmatprep.subr.bf16.mxu0 %v767_v16  ;;  %460 = vmatprep.subr.bf16.mxu1 %v767_v16 }
  0x5a   :  { %398 = vmatpush1.bf16.msra.mxu0 %v397_v23  ;;  %462 = vmatpush1.bf16.msra.mxu1 %v397_v23 }
  0x5b   :  { %400 = vmatprep.subr.bf16.mxu0 %v399_v24  ;;  %464 = vmatprep.subr.bf16.mxu1 %v399_v24 }
  0x5e   :  { %402 = vmatpush1.bf16.msra.mxu0 %v401_v33  ;;  %466 = vmatpush1.bf16.msra.mxu1 %v401_v33 }
  0x5f   :  { %404 = vmatprep.subr.bf16.mxu0 %v403_v34  ;;  %468 = vmatprep.subr.bf16.mxu1 %v403_v34 }
  0x62   :  { %406 = vmatpush1.bf16.msra.mxu0 %v405_v42  ;;  %470 = vmatpush1.bf16.msra.mxu1 %v405_v42 }
  0x63   :  { %408 = vmatprep.subr.bf16.mxu0 %v407_v43  ;;  %472 = vmatprep.subr.bf16.mxu1 %v407_v43 }
  0x66   :  { %410 = vmatpush1.bf16.msra.mxu0 %v409_v48  ;;  %474 = vmatpush1.bf16.msra.mxu1 %v409_v48 }
  0x67   :  { %476 = vmatprep.subr.bf16.mxu0 %v671_v3 }
  0x69   :  { %169 = vmatmul.mubr.f32.vlgmr.msra.gmra.mrb[0].mxu0 %v38_v49 }
  0x6a   :  { %478 = vmatpush1.bf16.msra.mxu0 %v673_v7 }
  0x6b   :  { %480 = vmatprep.subr.bf16.mxu0 %v675_v8 }
  0x6e   :  { %482 = vmatpush1.bf16.msra.mxu0 %v680_v13 }
  0x6f   :  { %484 = vmatprep.subr.bf16.mxu0 %v684_v14 }
  0x72   :  { %486 = vmatpush1.bf16.msra.mxu0 %v688_v19 }
  0x73   :  { %488 = vmatprep.subr.bf16.mxu0 %v692_v20 }
  0x76   :  { %490 = vmatpush1.bf16.msra.mxu0 %v696_v25 }
  0x77   :  { %492 = vmatprep.subr.bf16.mxu0 %v700_v26 }
  0x7a   :  { %494 = vmatpush1.bf16.msra.mxu0 %v704_v31 }
  0x7b   :  { %496 = vmatprep.subr.bf16.mxu0 %v708_v32 }
  0x7e   :  { %498 = vmatpush1.bf16.msra.mxu0 %v712_v37 }
  0x7f   :  { %500 = vmatprep.subr.bf16.mxu0 %v716_v38 }
  0x82   :  { %502 = vmatpush1.bf16.msra.mxu0 %v723_v44 }
  0x83   :  { %504 = vmatprep.subr.bf16.mxu0 %v727_v45 }
  0x86   :  { %506 = vmatpush1.bf16.msra.mxu0 %v731_v50 }
  0x87   :  { %508 = vmatprep.subr.bf16.mxu0 %v735_v51 }
  0x8a   :  { %510 = vmatpush1.bf16.msra.mxu0 %v739_v56 }
  0x8b   :  { %512 = vmatprep.subr.bf16.mxu0 %v743_v57 }
  0x8e   :  { %514 = vmatpush1.bf16.msra.mxu0 %v747_v62 }
  0x8f   :  { %516 = vmatprep.subr.bf16.mxu0 %v751_v63 }
  0x92   :  { %518 = vmatpush1.bf16.msra.mxu0 %v755_v5 }
  0x93   :  { %520 = vmatprep.subr.bf16.mxu0 %v759_v6 }
  0x96   :  { %522 = vmatpush1.bf16.msra.mxu0 %v763_v15 }
  0x97   :  { %524 = vmatprep.subr.bf16.mxu0 %v767_v16 }
  0x9a   :  { %526 = vmatpush1.bf16.msra.mxu0 %v397_v23 }
  0x9b   :  { %528 = vmatprep.subr.bf16.mxu0 %v399_v24 }
  0x9e   :  { %530 = vmatpush1.bf16.msra.mxu0 %v401_v33 }
  0x9f   :  { %532 = vmatprep.subr.bf16.mxu0 %v403_v34 }
  0xa2   :  { %534 = vmatpush1.bf16.msra.mxu0 %v405_v42 }
  0xa3   :  { %536 = vmatprep.subr.bf16.mxu0 %v407_v43 }
  0xa6   :  { %538 = vmatpush1.bf16.msra.mxu0 %v409_v48 }
 0x13c   :  { %v170_v3 = vpop.f32.mrb[0].mxu0 }
 0x13d   :  { %v172_v7 = vpop.f32.mrb[1].mxu0  ;;  %v175_v13 = vmul.f32 %v170_v3, %v38_v49 }
 0x13e   :  { %v176_v8 = vmul.f32 %v172_v7, %v718_v41 }
 0x140   :  { %241 = vmatprep.mubr.f32.mxu1 %v176_v8 }
 0x141   :  { %242 = vmatmul.mubr.f32.vlgmr.msra.gmra.mrb[0].mxu1 %v175_v13 }
 0x214   :  { %v243_v14 = vpop.f32.mrb[0].mxu1 }
 0x215   :  { %v245_v19 = vpop.f32.mrb[1].mxu1  ;;  %v248_v25 = vmul.f32 %v243_v14, %v38_v49 }
 0x216   :  { %v249_v20 = vmul.f32 %v245_v19, %v718_v41 }
 0x217   :  { %v323_v26 = vadd.f32 1e-08, %v248_v25 }
 0x218   :  { %314 = vmatprep.mubr.f32.mxu0 %v249_v20  ;;  %v324_v31 = vadd.f32 1e-08, %v249_v20 }
 0x219   :  { %315 = vmatmul.mubr.f32.vlgmr.msra.gmra.mrb[2].mxu0 %v248_v25  ;;  %544 = vrcp.f32 %v323_v26 }
 0x21a   :  { %546 = vrcp.f32 %v324_v31 }
 0x223   :  { %v545_v44 = vpop.eup %544 }
 0x224   :  { %v547_v50 = vpop.eup %546 }
 0x2ec   :  { %v316_v32 = vpop.f32.mrb[2].mxu0 }
 0x2ed   :  { %v321_v37 = vmul.f32 %v316_v32, %v38_v49  ;;  %v318_v38 = vpop.f32.mrb[3].mxu0 }
 0x2ee   :  { %v322_v45 = vmul.f32 %v318_v38, %v718_v41 }
 0x2ef   :  { %v326_v51 = vmul.f32 %v545_v44, %v321_v37 }
 0x2f0   :  { %v328_v52 = vmul.f32 %v547_v50, %v322_v45 }
 0x2f1   :  { %329 = vst [vmem:[#allocation7] sm:$0xff] %v326_v51 }
 0x2f2   :  { %330 = vst [vmem:[#allocation7 + $0x8] sm:$0xff] %v328_v52 }
 0x2f3   :  { %603 = shalt.err (!%p600_p6)
}
 0x2f4   :  { %s604_s10 = scalar_lea.hbm %s816_s2, 256 }
 0x2f5   :  { %p605_p7 = scmp.ne.s32.totalorder %s816_s2, %s604_s10  ;;  %p608_p8 = scmp.lt.u32.totalorder %s604_s10, %s816_s2 }
 0x2f7   :  { %p610_p9 = pnand %p608_p8, %p605_p7 }
 0x2f9   :  { %613 = shalt.err (!%p610_p9)
}
 0x2fa   :  { %340 = dma.vmem_to_hbm [thread:$0]  %s338_s6, 256, %s816_s2, [#allocation4]  }
 0x2fb   :  { %618 = dma.done.wait [#allocation4], 256  }
 0x2fc   :  { %619 = vsyncadd [#allocation4], 4294967040 }
 0x2fd   :  { %344 = vsyncpa [#allocation3], 1 }
 0x2fe   :  { %345 = vsyncpa [#allocation6], 1 }
 0x2ff   :  { %346 = vsyncpa [#allocation4], 1 }

</bundles_post_ra>
